<compile_context>
chip_gen: v7x
topology: tpu7x:2x2x1
jax: 0.10.0
libtpu: 0.0.40
codegen_flags: <defaults>
</compile_context>

<pallas_src>
import math
import functools

import jax
import jax.numpy as jnp
from jax import lax
from jax.experimental import pallas as pl
from jax.experimental.pallas import tpu as pltpu


MATMUL_DTYPE = jnp.bfloat16     # MXU operand dtype; accumulation stays f32


def _round_up(x, m):
    return (x + m - 1) // m * m


@functools.lru_cache(maxsize=None)
def _hw_budget():
    """Generation-aware tile caps / VMEM limit (v5e/v6e: 128 MiB, v7x: 64 MiB)."""
    vmem_cap = 64 << 20
    try:
        info = pltpu.get_tpu_info()
        vmem_cap = int(getattr(info, "vmem_capacity_bytes", vmem_cap))
    except Exception:
        pass
    if vmem_cap >= (100 << 20):                           # v5e / v6e
        return {"tile_m": 512, "tile_n": 512, "tile_k": 512, "vmem": 80 << 20}
    return {"tile_m": 256, "tile_n": 256, "tile_k": 512, "vmem": 40 << 20}  # v7x


def _pick_row_tile(m, cap):
    """Largest row tile <= cap that divides m and is a multiple of 8 (else full m)."""
    if m <= cap:
        return m
    t = cap - cap % 8
    while t >= 8:
        if m % t == 0:
            return t
        t -= 8
    return m


# ------------------------- Pallas kernels -------------------------

def _matmul_kernel(x_ref, w_ref, o_ref, acc_ref):
    # o = x @ w, K-axis ("arbitrary") accumulation in an f32 VMEM scratch.
    @pl.when(pl.program_id(2) == 0)
    def _():
        acc_ref[...] = jnp.zeros_like(acc_ref)

    acc_ref[...] += jnp.dot(
        x_ref[...].astype(MATMUL_DTYPE),
        w_ref[...].astype(MATMUL_DTYPE),
        preferred_element_type=jnp.float32,
    )

    @pl.when(pl.program_id(2) == pl.num_programs(2) - 1)
    def _():
        o_ref[...] = acc_ref[...].astype(o_ref.dtype)


def _mha_kernel(q_ref, k_ref, v_ref, wo_ref, bo_ref, out_ref, *rest):
    """One (batch, M-tile, head) per grid step; output projection fused via accumulation.

    q_ref: [1, tile_m, hd] head column block (scale pre-folded into the Q weights).
    k_ref/v_ref: [1, L, hd] head column blocks.
    wo_ref: [hd, A] row block of the (transposed) output projection; bo_ref: [1, A].
    out_ref: [1, tile_m, A] final projected output (written at the last head).
    rest: optional score_ref [1, 1, tile_m, L] (f32 probs), then acc_ref [tile_m, A] f32.
    """
    if len(rest) == 2:
        score_ref, acc_ref = rest
    else:
        score_ref = None
        (acc_ref,) = rest

    h = pl.program_id(2)

    @pl.when(h == 0)
    def _():
        acc_ref[...] = jnp.zeros_like(acc_ref)

    q = q_ref[0].astype(MATMUL_DTYPE)        # [tile_m, hd]
    k = k_ref[0].astype(MATMUL_DTYPE)        # [L, hd]
    v = v_ref[0].astype(MATMUL_DTYPE)        # [L, hd]

    # s = q @ k^T without an explicit transpose (contract the hd dims).
    s = lax.dot_general(q, k, (((1,), (1,)), ((), ())),
                        preferred_element_type=jnp.float32)          # [tile_m, L] f32

    m = jnp.max(s, axis=-1, keepdims=True)
    # TODO(synk): on v6e/v7x compute the exponent in bf16 (EUP is the binding slot at hd<=64).
    p = jnp.exp(s - m)
    denom = jnp.sum(p, axis=-1, keepdims=True)
    if score_ref is not None:
        inv = 1.0 / denom                        # exact: returned probs must sum to 1
    else:
        inv = pl.reciprocal(denom, approx=True)  # EUP slot on the scores-free perf path
    probs = p * inv
    # TODO(synk): attention_mask and dropout on probs omitted (attention_mask=None, eval mode).

    if score_ref is not None:
        score_ref[0, 0] = probs

    oh = lax.dot_general(probs.astype(MATMUL_DTYPE), v, (((1,), (0,)), ((), ())),
                         preferred_element_type=jnp.float32)          # [tile_m, hd] f32

    # Fused output projection as a per-head rank-hd update: acc += O_h @ Wo_h.
    acc_ref[...] += jnp.dot(oh.astype(MATMUL_DTYPE), wo_ref[...],
                            preferred_element_type=jnp.float32)

    @pl.when(h == pl.num_programs(2) - 1)
    def _():
        out_ref[0] = (acc_ref[...] + bo_ref[...]).astype(out_ref.dtype)


# ------------------------- wrappers -------------------------

def pallas_linear(x2d, w_t, out_dtype):
    """Tiled matmul x2d @ w_t (no bias). x2d: [M, K] f32/bf16, w_t: [K, N] bf16."""
    M, K = x2d.shape
    N = w_t.shape[1]
    budget = _hw_budget()
    tm = min(_round_up(M, 8), budget["tile_m"])
    tn = min(_round_up(N, 128), budget["tile_n"])
    tk = min(_round_up(K, 128), budget["tile_k"])
    Mp, Kp, Np = _round_up(M, tm), _round_up(K, tk), _round_up(N, tn)

    x_p = jnp.pad(x2d, ((0, Mp - M), (0, Kp - K))) if (Mp, Kp) != (M, K) else x2d
    w_p = jnp.pad(w_t, ((0, Kp - K), (0, Np - N))) if (Kp, Np) != (K, N) else w_t

    out = pl.pallas_call(
        _matmul_kernel,
        out_shape=jax.ShapeDtypeStruct((Mp, Np), out_dtype),
        grid=(Mp // tm, Np // tn, Kp // tk),
        in_specs=[
            pl.BlockSpec((tm, tk), lambda i, j, k: (i, k)),
            pl.BlockSpec((tk, tn), lambda i, j, k: (k, j)),
        ],
        out_specs=pl.BlockSpec((tm, tn), lambda i, j, k: (i, j)),
        scratch_shapes=[pltpu.VMEM((tm, tn), jnp.float32)],
        compiler_params=pltpu.CompilerParams(
            dimension_semantics=("parallel", "parallel", "arbitrary"),
            vmem_limit_bytes=budget["vmem"],
        ),
    )(x_p, w_p)
    if (Mp, Np) != (M, N):
        out = out[:M, :N]
    return out


def pallas_multihead_attention(q_arr, k_arr, v_arr, wo_t, bo, *, num_heads, head_size,
                               q_col=0, k_col=0, v_col=0, return_scores=False,
                               out_dtype=jnp.float32):
    """Multi-head attention + fused output projection, one head per grid step.

    q_arr: [B, M, Cq*A]; k_arr/v_arr: [B, L, C*A] (may alias the fused kqv projection).
    {q,k,v}_col select the A-wide slot; heads are addressed as hd-wide column blocks.
    Returns (out [B, M, A], scores [B, H, M, L] f32 or None).
    """
    B, M, _ = q_arr.shape
    L = k_arr.shape[1]
    H, hd = num_heads, head_size
    A = H * hd
    budget = _hw_budget()
    tile_m = _pick_row_tile(M, budget["tile_m"])

    def head_col(col):
        return lambda b, i, h, c=col: (b, 0, c * H + h)

    in_specs = [
        pl.BlockSpec((1, tile_m, hd), lambda b, i, h, c=q_col: (b, i, c * H + h)),
        pl.BlockSpec((1, L, hd), head_col(k_col)),
        pl.BlockSpec((1, L, hd), head_col(v_col)),
        pl.BlockSpec((hd, A), lambda b, i, h: (h, 0)),
        pl.BlockSpec((1, A), lambda b, i, h: (0, 0)),
    ]
    out_spec_o = pl.BlockSpec((1, tile_m, A), lambda b, i, h: (b, i, 0))
    if return_scores:
        out_shape = (jax.ShapeDtypeStruct((B, M, A), out_dtype),
                     jax.ShapeDtypeStruct((B, H, M, L), jnp.float32))
        out_specs = (out_spec_o,
                     pl.BlockSpec((1, 1, tile_m, L), lambda b, i, h: (b, h, i, 0)))
    else:
        out_shape = jax.ShapeDtypeStruct((B, M, A), out_dtype)
        out_specs = out_spec_o

    # TODO(synk): flash-style online-softmax L tiling for very long sequences.
    result = pl.pallas_call(
        _mha_kernel,
        out_shape=out_shape,
        grid=(B, M // tile_m, H),
        in_specs=in_specs,
        out_specs=out_specs,
        scratch_shapes=[pltpu.VMEM((tile_m, A), jnp.float32)],
        compiler_params=pltpu.CompilerParams(
            dimension_semantics=("parallel", "parallel", "arbitrary"),
            vmem_limit_bytes=budget["vmem"],
        ),
    )(q_arr, k_arr, v_arr, wo_t, bo.reshape(1, A))

    if return_scores:
        out, scores = result
        return out, scores
    return result, None


# ------------------------- module forward -------------------------

def multihead_attention_forward(params, keys, queries=None, return_scores=True):
    """Forward pass of MultiheadAttention (nystrom=False, conv=None, mask=None, eval mode).

    keys: [B, L, D] f32. Returns (out [B, M, A] f32, scores [B, H, M, L] f32 or None).
    """
    H = params["num_heads"]
    A = params["wo_t_bf16"].shape[0]
    hd = A // H
    B, L, D = keys.shape
    out_dtype = keys.dtype

    if queries is None:
        # Fused K/Q/V projection (one pass over activations); bf16 intermediate.
        kqv = pallas_linear(keys.reshape(B * L, D), params["w_kqv_t_bf16"],
                            out_dtype=MATMUL_DTYPE).reshape(B, L, 3 * A)
        return pallas_multihead_attention(
            kqv, kqv, kqv, params["wo_t_bf16"], params["bo"],
            num_heads=H, head_size=hd, q_col=1, k_col=0, v_col=2,
            return_scores=return_scores, out_dtype=out_dtype)

    M = queries.shape[1]
    kv = pallas_linear(keys.reshape(B * L, D), params["w_kv_t_bf16"],
                       out_dtype=MATMUL_DTYPE).reshape(B, L, 2 * A)
    q = pallas_linear(queries.reshape(B * M, D), params["wq_scaled_t_bf16"],
                      out_dtype=MATMUL_DTYPE).reshape(B, M, A)
    return pallas_multihead_attention(
        q, kv, kv, params["wo_t_bf16"], params["bo"],
        num_heads=H, head_size=hd, q_col=0, k_col=0, v_col=1,
        return_scores=return_scores, out_dtype=out_dtype)


# ------------------------- parameters (xavier normal, deterministic) -------------------------

def init_params(key, input_size, attention_size, num_heads):
    def xavier_normal(k, out_f, in_f):
        std = math.sqrt(2.0 / (in_f + out_f))
        return std * jax.random.normal(k, (out_f, in_f), dtype=jnp.float32)

    head_size = attention_size // num_heads
    scale = 1.0 / math.sqrt(head_size)          # module uses dk = head_size
    k1, k2, k3, k4 = jax.random.split(key, 4)
    wk = xavier_normal(k1, attention_size, input_size)   # PyTorch Linear weight [out, in]
    wq = xavier_normal(k2, attention_size, input_size)
    wv = xavier_normal(k3, attention_size, input_size)
    wo = xavier_normal(k4, attention_size, attention_size)
    bo = jnp.zeros((attention_size,), dtype=jnp.float32)
    wk_t, wq_t, wv_t, wo_t = wk.T, wq.T, wv.T, wo.T      # stored transposed: [in, out]

    wq_t_scaled = wq_t * scale                           # fold 1/sqrt(dk) into Q weights
    to_bf16 = lambda a: a.astype(MATMUL_DTYPE)
    return {
        # f32 reference copies (unscaled)
        "wk_t": wk_t, "wq_t": wq_t, "wv_t": wv_t, "wo_t": wo_t, "bo": bo,
        # bf16 kernel parameters (scale pre-folded into the Q columns)
        "w_kqv_t_bf16": to_bf16(jnp.concatenate([wk_t, wq_t_scaled, wv_t], axis=1)),
        "w_kv_t_bf16": to_bf16(jnp.concatenate([wk_t, wv_t], axis=1)),
        "wq_scaled_t_bf16": to_bf16(wq_t_scaled),
        "wo_t_bf16": to_bf16(wo_t),
        "num_heads": num_heads,
    }


# ------------------------- reference (pure jnp, f32) -------------------------

def _split_heads(x, num_heads):
    B, L, A = x.shape
    hd = A // num_heads
    return x.reshape(B, L, num_heads, hd).transpose(0, 2, 1, 3)


def _merge_heads(x):
    B, H, L, hd = x.shape
    return x.transpose(0, 2, 1, 3).reshape(B, L, H * hd)


def reference_forward(params, keys):
    A = params["wk_t"].shape[1]
    H = params["num_heads"]
    hd = A // H
    k = keys @ params["wk_t"]
    q = keys @ params["wq_t"]
    v = keys @ params["wv_t"]
    k4, q4, v4 = (_split_heads(t, H) for t in (k, q, v))
    s = jnp.einsum("bhmd,bhld->bhml", q4, k4) / math.sqrt(hd)
    scores = jax.nn.softmax(s, axis=-1)
    out4 = jnp.einsum("bhml,bhld->bhmd", scores, v4)
    out = _merge_heads(out4) @ params["wo_t"] + params["bo"]
    return out, scores


if __name__ == "__main__":
    B, L, D = 2, 8, 32          # batch, seq length, input features
    A, H = 128, 2               # attention_size, num_heads  (head_size = 64)

    root = jax.random.PRNGKey(0)
    k_inp, k_par = jax.random.split(root)
    keys = jax.random.normal(k_inp, (B, L, D), dtype=jnp.float32)
    params = init_params(k_par, D, A, H)

    out, scores = multihead_attention_forward(params, keys, return_scores=True)
    out = jax.block_until_ready(out)
    scores = jax.block_until_ready(scores)

    ref_out, ref_scores = reference_forward(params, keys)
    assert out.shape == (B, L, A)
    assert scores.shape == (B, H, L, L)
    # bf16 weights + bf16 MXU operands -> looser tolerance than pure f32.
    assert jnp.allclose(out, ref_out, atol=4e-2, rtol=4e-2), \
        float(jnp.max(jnp.abs(out - ref_out)))
    assert jnp.allclose(scores, ref_scores, atol=3e-2, rtol=3e-2), \
        float(jnp.max(jnp.abs(scores - ref_scores)))

    # Scores-free perf path (approx reciprocal, no [B,H,M,L] f32 HBM writeback).
    out_fast, scores_none = multihead_attention_forward(params, keys, return_scores=False)
    out_fast = jax.block_until_ready(out_fast)
    assert scores_none is None
    assert jnp.allclose(out_fast, ref_out, atol=4e-2, rtol=4e-2), \
        float(jnp.max(jnp.abs(out_fast - ref_out)))

    print("KERNEL_OK")
</pallas_src>

<mosaic_0001>
module attributes {stable_mosaic.version = 11 : i64} {
  func.func @_matmul_kernel(%arg0: i32, %arg1: i32, %arg2: i32, %arg3: memref<16x128xf32, #tpu.memory_space<vmem>>, %arg4: memref<128x256xbf16, #tpu.memory_space<vmem>>, %arg5: memref<16x256xbf16, #tpu.memory_space<vmem>>, %arg6: memref<16x256xf32, #tpu.memory_space<vmem>>) attributes {dimension_semantics = [#tpu.dimension_semantics<parallel>, #tpu.dimension_semantics<parallel>, #tpu.dimension_semantics<arbitrary>], iteration_bounds = array<i64: 1, 2, 1>, scalar_prefetch = 0 : i64, scratch_operands = 1 : i64, tpu.core_type = #tpu.core_type<tc>, window_params = [{transform_indices = @transform_0, window_bounds = array<i64: 16, 128>}, {transform_indices = @transform_1, window_bounds = array<i64: 128, 256>}, {transform_indices = @transform_2, window_bounds = array<i64: 16, 256>}]} {
    %c0_i32 = arith.constant 0 : i32
    %0 = arith.cmpi eq, %arg2, %c0_i32 : i32
    %1 = arith.extui %0 : i1 to i32
    %c0_i32_0 = arith.constant 0 : i32
    %2 = arith.cmpi ne, %1, %c0_i32_0 : i32
    scf.if %2 {
      %cst_10 = arith.constant 0.000000e+00 : f32
      %13 = vector.broadcast %cst_10 : f32 to vector<16x256xf32>
      %c0_11 = arith.constant 0 : index
      %c0_12 = arith.constant 0 : index
      %14 = vector.load %arg6[%c0_11, %c0_12] : memref<16x256xf32, #tpu.memory_space<vmem>>, vector<16x256xf32>
      tpu.vector_store %arg6[%c0_11, %c0_12], %13 {strides = array<i32>} : memref<16x256xf32, #tpu.memory_space<vmem>>, vector<16x256xf32>,
    } else {
    }
    %c0 = arith.constant 0 : index
    %c0_1 = arith.constant 0 : index
    %3 = vector.load %arg6[%c0, %c0_1] : memref<16x256xf32, #tpu.memory_space<vmem>>, vector<16x256xf32>
    %c0_2 = arith.constant 0 : index
    %c0_3 = arith.constant 0 : index
    %4 = vector.load %arg3[%c0_2, %c0_3] : memref<16x128xf32, #tpu.memory_space<vmem>>, vector<16x128xf32>
    %5 = arith.truncf %4 : vector<16x128xf32> to vector<16x128xbf16>
    %c0_4 = arith.constant 0 : index
    %c0_5 = arith.constant 0 : index
    %6 = vector.load %arg4[%c0_4, %c0_5] : memref<128x256xbf16, #tpu.memory_space<vmem>>, vector<128x256xbf16>
    %cst = arith.constant dense<0.000000e+00> : vector<16x256xf32>
    %7 = tpu.matmul %5, %6, %cst {dimension_numbers = #tpu.dot_dimension_numbers<[1], [0], [0], [1], [0, 0, 1, 1], [], []>} : vector<16x128xbf16>, vector<128x256xbf16>, vector<16x256xf32> -> vector<16x256xf32>
    %8 = arith.addf %3, %7 : vector<16x256xf32>
    %c0_6 = arith.constant 0 : index
    %c0_7 = arith.constant 0 : index
    %9 = vector.load %arg6[%c0_6, %c0_7] : memref<16x256xf32, #tpu.memory_space<vmem>>, vector<16x256xf32>
    tpu.vector_store %arg6[%c0_6, %c0_7], %8 {strides = array<i32>} : memref<16x256xf32, #tpu.memory_space<vmem>>, vector<16x256xf32>,
    %c0_i32_8 = arith.constant 0 : i32
    %10 = arith.cmpi eq, %arg2, %c0_i32_8 : i32
    %11 = arith.extui %10 : i1 to i32
    %c0_i32_9 = arith.constant 0 : i32
    %12 = arith.cmpi ne, %11, %c0_i32_9 : i32
    scf.if %12 {
      %c0_10 = arith.constant 0 : index
      %c0_11 = arith.constant 0 : index
      %13 = vector.load %arg6[%c0_10, %c0_11] : memref<16x256xf32, #tpu.memory_space<vmem>>, vector<16x256xf32>
      %14 = arith.truncf %13 : vector<16x256xf32> to vector<16x256xbf16>
      %c0_12 = arith.constant 0 : index
      %c0_13 = arith.constant 0 : index
      %15 = vector.load %arg5[%c0_12, %c0_13] : memref<16x256xbf16, #tpu.memory_space<vmem>>, vector<16x256xbf16>
      tpu.vector_store %arg5[%c0_12, %c0_13], %14 {strides = array<i32>} : memref<16x256xbf16, #tpu.memory_space<vmem>>, vector<16x256xbf16>,
    } else {
    }
    return
  }
  func.func @transform_0(%arg0: i32, %arg1: i32, %arg2: i32) -> (i32, i32) {
    %c0_i32 = arith.constant 0 : i32
    return %arg0, %arg2 : i32, i32
  }
  func.func @transform_1(%arg0: i32, %arg1: i32, %arg2: i32) -> (i32, i32) {
    %c0_i32 = arith.constant 0 : i32
    return %arg2, %arg1 : i32, i32
  }
  func.func @transform_2(%arg0: i32, %arg1: i32, %arg2: i32) -> (i32, i32) {
    %c0_i32 = arith.constant 0 : i32
    return %arg0, %arg1 : i32, i32
  }
}

</mosaic_0001>

<bundles_post_ra>
// kernel: tpu_custom_call.1
= control target key start
LH: loop header
LB: loop body
LE: loop exit
PB: predicated region body
PF: predicated region fallthrough
CT: control target
= control target key end

     0   :  { %7 = vsyncpa [#allocation4], 0  ;;  %s1084_s0 = inlined_call_operand.hbm [shape: f32[16,128], index: 0, kind: input, shape index: {}]   ;;  %s1085_s1 = inlined_call_operand.hbm [shape: bf16[128,512], index: 1, kind: input, shape index: {}]   ;;  %s1086_s2 = inlined_call_operand.hbm [shape: bf16[16,512], index: 2, kind: output, shape index: {}]  }
   0x1   :  { %8 = vsyncpa [#allocation7], 0 }
   0x2   :  { %10 = vsyncpa [#allocation7 + $0x1], 0 }
   0x3   :  { %11 = vsyncpa [#allocation5], 0 }
   0x4   :  { %13 = vsyncpa [#allocation5 + $0x1], 0  ;;  %s840_s9 = smov 0   ;;  %s842_s10 = smov 0  }
   0x5   :  { %s844_s11 = smov 0   ;;  %s846_s12 = smov 0  }
   0x6   :  { %s848_s13 = smov 0   ;;  %s850_s14 = smov 0  }
   0x7 LB: > { %s526_s15 = sadd.s32 4294967295, %s813_s14   ;;  %s527_s16 = sadd.s32 4294967294, %s813_s14   ;;  %s813_s14 = sphi %s850_s14, %s19_s14   ;;  %s809_s13 = sphi %s848_s13, %s1112_s13   ;;  %s805_s12 = sphi %s846_s12, %s1111_s12   ;;  %s801_s11 = sphi %s844_s11, %s1110_s11   ;;  %s797_s10 = sphi %s842_s10, %s1109_s10   ;;  %s793_s9 = sphi %s840_s9, %s1108_s9  }
   0x8   : > { %p82_p0 = scmp.ne.s32.totalorder %s801_s11, %s797_s10  ;;  %p83_p1 = scmp.eq.s32.totalorder %s813_s14, 0 }
   0x9   : > { %p88_p2 = scmp.ne.s32.totalorder %s797_s10, %s793_s9  ;;  %p877_p3 = scmp.eq.s32.totalorder %s526_s15, 0 }
   0xa   : > { %p881_p4 = por %p83_p1, %p82_p0  ;;  %p114_p5 = scmp.eq.s32.totalorder %s526_s15, 1 }
   0xb   : > { %s1093_s17 = scalar_select %p877_p3, 1, 0 }
   0xc   : > { %p887_p6 = por %p877_p3, %p88_p2  ;;  %p120_p7 = scmp.eq.s32.totalorder %s527_s16, 1 }
   0xd   : > { %p891_p8 = por %p114_p5, %p82_p0  ;;  %p528_p9 = scmp.ge.s32.totalorder %s813_s14, 1 }
   0xe   : > { %s1095_s19 = scalar_select %p887_p6, 1, 0 }
   0xf   : > { %s1096_s20 = scalar_select %p891_p8, 1, 0 }
  0x10   : > { %p896_p10 = por %p120_p7, %p88_p2  ;;  %p127_p11 = scmp.lt.s32.totalorder %s813_s14, 3 }
  0x11   : > { %s815_s23 = smov [#allocation3]   ;;  %p586_p1 = scmp.lt.s32.totalorder %s813_s14, 2 }
  0x12   : > { %s1097_s21 = scalar_select %p896_p10, 1, 0 }
  0x13   : > { %p901_p12 = pnand %p528_p9, %p127_p11  ;;  %s143_s24 = sshll.u32 %s815_s23, 4  ;;  %s905_s24 = int_to_ptr.vmem [resolvable:$true] %s143_s24 }
  0x14   : > { %p919_p2 = pnand %p586_p1, %p881_p4  ;;  %s34_s27 = sadd.s32 1, %s809_s13 }
  0x15   : > { %s1098_s22 = scalar_select %p901_p12, 1, 0 }
  0x16   : > { %p573_p13 = pneg %p901_p12  ;;  %s669_s30 = scalar_lea.hbm %s1084_s0, 256 }
  0x17   : > { %s1100_s26 = scalar_select %p919_p2, 1, 0 }
  0x18   : > { %p913_p5 = pnand %p573_p13, %p877_p3  ;;  %p670_p7 = scmp.ne.s32.totalorder %s1084_s0, %s669_s30 }
  0x19   : > { %p676_p4 = scmp.lt.u32.totalorder %s669_s30, %s1084_s0 }
  0x1a   : > { %p671_p9 = pneg %p913_p5 }
  0x1c   : > { %p672_p11 = pnand %p671_p9, %p670_p7 }
  0x1e   : > { %p673_p13 = pneg %p672_p11 }
  0x20   : > { %p678_p1 = pnand %p676_p4, %p673_p13 }
  0x22   : > { %681 = shalt.err (!%p678_p1)
}
  0x23   : > { %s682_s7 = scalar_lea.vmem %s905_s24, 256  ;;  %p690_p6 = scmp.lt.s32.totalorder %s905_s24, %s905_s24 }
  0x24   : > { %p683_p0 = scmp.ne.s32.totalorder %s905_s24, %s682_s7  ;;  %p691_p3 = scmp.lt.s32.totalorder %s682_s7, %s682_s7 }
  0x26   : > { %p685_p10 = pnand %p683_p0, %p671_p9  ;;  %p692_p12 = por %p691_p3, %p690_p6 }
  0x28   : > { %p686_p8 = pneg %p685_p10 }
  0x2a   : > { %p693_p2 = pnand %p692_p12, %p686_p8 }
  0x2c   : > { %696 = shalt.err (!%p693_p2)
}
  0x2d   : > { %s816_s8 = smov 128   ;;  %s817_s15 = smov 8  }
  0x2e   : > { %576 = dma.hbm_to_vmem [thread:$0]  (!%p913_p5), %s1084_s0, 256, %s905_s24, [#allocation4], %s816_s8, %s816_s8, %s817_s15  }
  0x2f   : > { %p36_p3 = scmp.ge.s32.totalorder %s34_s27, 2  ;;  %s75_s23 = sadd.s32 1, %s801_s11 }
  0x30   : > { %s157_s28 = sand.u32 1, %s801_s11   ;;  %s561_s3 = sshll.u32 %s809_s13, 7 }
  0x31   : > { %s1114_s27 = smov (%p36_p3, %s34_s27), 0  ;;  %s531_s29 = sshll.u32 %s157_s28, 7 }
  0x32   : > { %s71_s30 = ssub.s32 %s809_s13, %s1114_s27  ;;  %s958_s5 = scalar_lea.hbm %s1085_s1, %s561_s3 }
  0x33   : > { %p73_p6 = scmp.eq.s32.totalorder %s71_s30, 0  ;;  %s161_s24 = scalar_lea.vmem [#allocation6], %s531_s29 }
  0x34   : > { %s171_s6 = sshll.u32 %s161_s24, 4  ;;  %s965_s16 = scalar_lea.sflag [#allocation7], %s157_s28  ;;  %s963_s6 = int_to_ptr.vmem [resolvable:$true] %s171_s6 }
  0x35   : > { %s961_s7 = scalar_select %p73_p6, %s801_s11, %s75_s23  }
  0x36   : > { %s697_s18 = scalar_lea.hbm %s958_s5, 2048  ;;  %p1101_p10 = scmp.ne.s32.totalorder %s1100_s26, 0 }
  0x37   : > { %p698_p8 = scmp.ne.s32.totalorder %s958_s5, %s697_s18  ;;  %s702_s25 = scalar_lea.hbm %s1085_s1, 4096 }
  0x38   : > { %p699_p12 = pneg %p1101_p10  ;;  %p703_p2 = scmp.lt.u32.totalorder %s958_s5, %s1085_s1 }
  0x39   : > { %p704_p7 = scmp.lt.u32.totalorder %s702_s25, %s697_s18  ;;  %p706_p11 = scmp.lt.u32.totalorder %s697_s18, %s958_s5 }
  0x3a   : > { %p700_p0 = pnand %p699_p12, %p698_p8 }
  0x3b   : > { %p705_p9 = por %p704_p7, %p703_p2 }
  0x3c   : > { %p701_p5 = pneg %p700_p0 }
  0x3d   : > { %p707_p13 = por %p706_p11, %p705_p9 }
  0x3f   : > { %p708_p4 = pnand %p707_p13, %p701_p5 }
  0x41   : > { %711 = shalt.err (!%p708_p4)
}
  0x42   : > { %s712_s23 = scalar_lea.vmem %s963_s6, 2048  ;;  %s818_s28 = smov [#allocation6]  }
  0x43   : > { %p713_p1 = scmp.ne.s32.totalorder %s963_s6, %s712_s23  ;;  %s717_s24 = sshll.u32 %s818_s28, 4  ;;  %s718_s24 = int_to_ptr.vmem [resolvable:$false] %s717_s24 }
  0x44   : > { %s719_s30 = scalar_lea.vmem %s718_s24, 4096  ;;  %p720_p8 = scmp.lt.s32.totalorder %s963_s6, %s718_s24 }
  0x45   : > { %p715_p3 = pnand %p713_p1, %p699_p12  ;;  %p721_p0 = scmp.lt.s32.totalorder %s719_s30, %s712_s23 }
  0x47   : > { %p716_p6 = pneg %p715_p3  ;;  %p722_p2 = por %p721_p0, %p720_p8 }
  0x49   : > { %p723_p7 = pnand %p722_p2, %p716_p6 }
  0x4b   : > { %726 = shalt.err (!%p723_p7)
}
  0x4c   : > { %s819_s18 = smov 256   ;;  %p1102_p12 = scmp.ne.s32.totalorder %s1098_s22, 0 }
  0x4d   : > { %580 = dma.hbm_to_vmem [thread:$0]  (!%p1101_p10), %s958_s5, 2048, %s963_s6, %s965_s16, %s819_s18, %s816_s8, %s817_s15  }
  0x4e   : > { %183 = sbr.rel (%p1102_p12) target bundleno = 356 (0x164), region = 28  ;;  %p1103_p5 = scmp.ne.s32.totalorder (!%p1102_p12), %s1093_s17, 0 }
  0x55   : > { %780 = dma.done.wait (%p1103_p5), [#allocation4], 256  }
  0x56   : > { %782 = vsyncadd (%p1103_p5), [#allocation4], 4294967040  ;;  %s1002_s3 = sand.u32 1, %s797_s10   ;;  %p1104_p10 = scmp.ne.s32.totalorder %s1095_s19, 0 }
  0x57   : > { %s536_s26 = sshll.u32 %s1002_s3, 7  ;;  %s190_s25 = scalar_lea.sflag [#allocation7], %s1002_s3 }
  0x58   : > { %s1006_s29 = scalar_lea.vmem [#allocation6], %s536_s26 }
  0x59   : > { %784 = dma.done.wait (%p1104_p10), %s190_s25, 2048  }
  0x5a   : > { %786 = vsyncadd (%p1104_p10), %s190_s25, 4294965248  ;;  %v820_v0 = vmov 0   ;;  %v645_v1 = vld [vmem:[%s1006_s29 + $0x4] ss:$8 sps:$4 sm:$0xff]   ;;  %v647_v2 = vld [vmem:[%s1006_s29] ss:$8 sps:$4 sm:$0xff]  }
  0x5b   : > { %363 = vmatprep.mubr.bf16.mxu0 %v820_v0  ;;  %331 = vmatprep.subr.bf16.mxu0 %v645_v1  ;;  %v648_v3 = vld [vmem:[%s1006_s29 + $0x14] ss:$8 sps:$4 sm:$0xff]   ;;  %v650_v4 = vld [vmem:[%s1006_s29 + $0x10] ss:$8 sps:$4 sm:$0xff]   ;;  %v651_v5 = vld [vmem:[%s1006_s29 + $0x24] ss:$8 sps:$4 sm:$0xff]  }
  0x5c   : > { %332 = vmatpush1.bf16.msra.mxu0 %v647_v2  ;;  %v653_v6 = vld [vmem:[%s1006_s29 + $0x20] ss:$8 sps:$4 sm:$0xff]   ;;  %v654_v7 = vld [vmem:[%s1006_s29 + $0x34] ss:$8 sps:$4 sm:$0xff]   ;;  %v656_v8 = vld [vmem:[%s1006_s29 + $0x30] ss:$8 sps:$4 sm:$0xff]  }
  0x5d   : > { %333 = vmatprep.subr.bf16.mxu0 %v648_v3  ;;  %v657_v9 = vld [vmem:[%s1006_s29 + $0x44] ss:$8 sps:$4 sm:$0xff]   ;;  %v659_v10 = vld [vmem:[%s1006_s29 + $0x40] ss:$8 sps:$4 sm:$0xff]   ;;  %v660_v11 = vld [vmem:[%s1006_s29 + $0x54] ss:$8 sps:$4 sm:$0xff]  }
  0x5e   : > { %v662_v12 = vld [vmem:[%s1006_s29 + $0x50] ss:$8 sps:$4 sm:$0xff]   ;;  %v663_v13 = vld [vmem:[%s1006_s29 + $0x64] ss:$8 sps:$4 sm:$0xff]   ;;  %v665_v14 = vld [vmem:[%s1006_s29 + $0x60] ss:$8 sps:$4 sm:$0xff]  }
  0x5f   : > { %v666_v15 = vld [vmem:[%s1006_s29 + $0x74] ss:$8 sps:$4 sm:$0xff]   ;;  %v668_v16 = vld [vmem:[%s1006_s29 + $0x70] ss:$8 sps:$4 sm:$0xff]   ;;  %s537_s17 = sshll.u32 %s1002_s3, 4  ;;  %s564_s8 = sshll.u32 %s805_s12, 7 }
  0x60   : > { %334 = vmatpush1.bf16.msra.mxu0 %v650_v4  ;;  %v232_v17 = vld [vmem:[#allocation3] sm:$0xff]  ;;  %v233_v18 = vld [vmem:[#allocation3 + $0x8] sm:$0xff]  ;;  %s213_s19 = scalar_lea.vmem [#allocation8], %s537_s17  ;;  %s1035_s6 = scalar_lea.hbm %s1086_s2, %s564_s8 }
  0x61   : > { %335 = vmatprep.subr.bf16.mxu0 %v651_v5  ;;  %v234_v19 = vpack.c.bf16 %v233_v18, %v232_v17  ;;  %s420_s22 = sshll.u32 %s213_s19, 4  ;;  %s404_s16 = scalar_lea.sflag [#allocation5], %s1002_s3  ;;  %s1030_s22 = int_to_ptr.vmem [resolvable:$true] %s420_s22 }
  0x62   : > { %s727_s4 = scalar_lea.vmem %s1030_s22, 256  ;;  %p1105_p11 = scmp.ne.s32.totalorder %s1096_s20, 0 }
  0x63   : > { %p728_p9 = scmp.ne.s32.totalorder %s1030_s22, %s727_s4  ;;  %s821_s12 = smov [#allocation8]  }
  0x64   : > { %336 = vmatpush1.bf16.msra.mxu0 %v653_v6  ;;  %s731_s23 = sshll.u32 %s821_s12, 4  ;;  %s732_s23 = int_to_ptr.vmem [resolvable:$false] %s731_s23 }
  0x65   : > { %337 = vmatprep.subr.bf16.mxu0 %v654_v7  ;;  %p729_p13 = pnand %p728_p9, %p1105_p11  ;;  %s733_s28 = scalar_lea.vmem %s732_s23, 512 }
  0x66   : > { %p734_p1 = scmp.lt.s32.totalorder %s1030_s22, %s732_s23  ;;  %p735_p3 = scmp.lt.s32.totalorder %s733_s28, %s727_s4 }
  0x67   : > { %p730_p4 = pneg %p729_p13 }
  0x68   : > { %338 = vmatpush1.bf16.msra.mxu0 %v656_v8  ;;  %p736_p6 = por %p735_p3, %p734_p1 }
  0x69   : > { %339 = vmatprep.subr.bf16.mxu0 %v657_v9 }
  0x6a   : > { %p737_p8 = pnand %p736_p6, %p730_p4 }
  0x6c   : > { %340 = vmatpush1.bf16.msra.mxu0 %v659_v10 }
  0x6d   : > { %341 = vmatprep.subr.bf16.mxu0 %v660_v11 }
  0x70   : > { %342 = vmatpush1.bf16.msra.mxu0 %v662_v12 }
  0x71   : > { %343 = vmatprep.subr.bf16.mxu0 %v663_v13 }
  0x74   : > { %344 = vmatpush1.bf16.msra.mxu0 %v665_v14 }
  0x75   : > { %345 = vmatprep.subr.bf16.mxu0 %v666_v15 }
  0x78   : > { %346 = vmatpush1.bf16.msra.mxu0 %v668_v16 }
  0x7b   : > { %364 = vmatmul.mubr.bf16.vlgmr.msra.gmra.mrb[0].mxu0 %v234_v19 }
 0x14e   : > { %v365_v20 = vpop.f32.mrb[0].mxu0 }
 0x14f   : > { %v367_v21 = vpop.f32.mrb[1].mxu0 }
 0x150   : > { %v562_v22 = vpack.c.bf16 %v367_v21, %v365_v20  ;;  %v369_v23 = vpop.f32.mrb[2].mxu0 }
 0x151   : > { %v371_v24 = vpop.f32.mrb[3].mxu0 }
 0x152   : > { %401 = vst [vmem:[%s213_s19] sm:$0xff] %v562_v22  ;;  %v563_v25 = vpack.c.bf16 %v371_v24, %v369_v23 }
 0x154   : > { %402 = vst [vmem:[%s213_s19 + $0x8] sm:$0xff] %v563_v25 }
 0x155   : > { %740 = shalt.err (!%p737_p8)
}
 0x156   : > { %s741_s24 = scalar_lea.hbm %s1035_s6, 256  ;;  %s745_s26 = scalar_lea.hbm %s1086_s2, 512 }
 0x157   : > { %p742_p0 = scmp.ne.s32.totalorder %s1035_s6, %s741_s24  ;;  %p746_p12 = scmp.lt.u32.totalorder %s1035_s6, %s1086_s2 }
 0x158   : > { %p747_p5 = scmp.lt.u32.totalorder %s745_s26, %s741_s24  ;;  %p749_p9 = scmp.lt.u32.totalorder %s741_s24, %s1035_s6 }
 0x159   : > { %p743_p2 = pnand %p742_p0, %p1105_p11 }
 0x15a   : > { %p748_p10 = por %p747_p5, %p746_p12 }
 0x15b   : > { %p744_p7 = pneg %p743_p2 }
 0x15c   : > { %p750_p13 = por %p749_p9, %p748_p10 }
 0x15e   : > { %p751_p4 = pnand %p750_p13, %p744_p7 }
 0x160   : > { %754 = shalt.err (!%p751_p4)
}
 0x161   : > { %s822_s17 = smov 128   ;;  %s823_s19 = smov 256  }
 0x162   : > { %s824_s8 = smov 8  }
 0x163   : > { %571 = dma.vmem_to_hbm [thread:$0]  (%p1105_p11), %s1030_s22, 256, %s1035_s6, %s404_s16, %s822_s17, %s823_s19, %s824_s8  }
 0x164 PF: > { %s435_s15 = sand.u32 1, %s793_s9   ;;  %p1106_p1 = scmp.ne.s32.totalorder %s1097_s21, 0 }
 0x165   : > { %p1107_p3 = scmp.ge.s32.totalorder %s813_s14, 2  ;;  %s436_s5 = scalar_lea.sflag [#allocation5], %s435_s15 }
 0x167   : > { %p582_p6 = pnand %p1107_p3, %p1106_p1 }
 0x169   : > { %788 = dma.done.wait (!%p582_p6), %s436_s5, 256  }
 0x16a   : > { %790 = vsyncadd (!%p582_p6), %s436_s5, 4294967040  ;;  %s19_s14 = sadd.s32 1, %s813_s14   ;;  %s1108_s9 = smov %s797_s10 }
 0x16b   : > { %p16_p8 = scmp.ge.s32.totalorder %s19_s14, 4   ;;  %s1109_s10 = smov %s801_s11 }
 0x16c   : > { %s1110_s11 = smov %s961_s7  ;;  %s1111_s12 = smov %s809_s13 }
 0x16d   : > { %s1112_s13 = smov %s1114_s27  ;;  %18 = sbr.rel (!%p16_p8) target bundleno = 7 (0x7), region = 87 }
 0x174   :  { %441 = vsyncpa [#allocation4], 1 }
 0x175   :  { %443 = vsyncpa [#allocation4 + $0x1], 1 }
 0x176   :  { %444 = vsyncpa [#allocation7], 1 }
 0x177   :  { %446 = vsyncpa [#allocation7 + $0x1], 1 }
 0x178   :  { %447 = vsyncpa [#allocation5], 1 }
 0x179   :  { %449 = vsyncpa [#allocation5 + $0x1], 1 }

</bundles_post_ra>
